<compile_context>
chip_gen: v5e
topology: v5e:2x2
jax: 0.10.0
libtpu: 0.0.40
codegen_flags: <defaults>
</compile_context>

<pallas_src>
import math
import jax
import jax.numpy as jnp
from jax.experimental import pallas as pl
from jax.experimental.pallas import tpu as pltpu


def _round_up(x, m):
    return ((x + m - 1) // m) * m


def _patch_embed_kernel(x_ref, w_ref, b_ref, o_ref):
    # (tile_m, K) @ (K, E) on the MXU, f32 accumulation, + bias broadcast.
    acc = jnp.dot(x_ref[...], w_ref[...], preferred_element_type=jnp.float32)
    acc = acc + b_ref[...]
    o_ref[...] = acc.astype(o_ref.dtype)


def patch_embed_pallas(x, w, b, *, patch_size, tile_m=256):
    """PatchEmbed forward.

    x: (B, C, H, W)                 input image batch
    w: (E, C, P, P)                 Conv2d weight (PyTorch layout)
    b: (E,)                         Conv2d bias
    returns: (B, num_patches, E)
    """
    B, C, H, W = x.shape
    P = patch_size
    assert H % P == 0 and W % P == 0, "image size must be divisible by patch size"
    nH, nW = H // P, W // P
    num_patches = nH * nW
    E = w.shape[0]
    K = C * P * P

    # --- im2col (pure layout): (B,C,nH,P,nW,P) -> (B,nH,nW,C,P,P) -> (M, K) ---
    patches = x.reshape(B, C, nH, P, nW, P)
    patches = patches.transpose(0, 2, 4, 1, 3, 5).reshape(B * num_patches, K)

    # Conv weight (E, C, P, P) -> (K, E) so the kernel computes patches @ Wk + b.
    w_mat = w.reshape(E, K).T
    b_2d = b.reshape(1, E)

    M = B * num_patches
    # MXU-friendly row tile (multiple of 8 sublanes), clamped for small problems;
    # keep >= 2 grid steps when possible so both v7x TensorCores get work.
    tile_m = max(8, min(tile_m, _round_up(M, 8)))
    if pl.cdiv(M, tile_m) < 2 and M > 8:
        tile_m = _round_up(pl.cdiv(M, 2), 8)
    grid_m = pl.cdiv(M, tile_m)
    M_pad = grid_m * tile_m
    if M_pad != M:
        patches = jnp.pad(patches, ((0, M_pad - M), (0, 0)))

    itemsize = jnp.dtype(x.dtype).itemsize
    cost = pl.CostEstimate(
        flops=2 * M_pad * K * E,
        transcendentals=0,
        bytes_accessed=(patches.size * itemsize
                        + w_mat.size * jnp.dtype(w_mat.dtype).itemsize
                        + b_2d.size * jnp.dtype(b_2d.dtype).itemsize
                        + M_pad * E * itemsize),
    )

    out = pl.pallas_call(
        _patch_embed_kernel,
        out_shape=jax.ShapeDtypeStruct((M_pad, E), x.dtype),
        grid_spec=pltpu.PrefetchScalarGridSpec(
            num_scalar_prefetch=0,
            grid=(grid_m,),
            in_specs=[
                pl.BlockSpec((tile_m, K), lambda i: (i, 0)),  # token row tile
                pl.BlockSpec((K, E), lambda i: (0, 0)),       # projection weight (resident)
                pl.BlockSpec((1, E), lambda i: (0, 0)),       # bias
            ],
            out_specs=pl.BlockSpec((tile_m, E), lambda i: (i, 0)),
        ),
        compiler_params=pltpu.CompilerParams(
            dimension_semantics=("parallel",),
        ),
        cost_estimate=cost,
    )(patches, w_mat, b_2d)

    return out[:M].reshape(B, num_patches, E)


def patch_embed_reference(x, w, b, *, patch_size):
    """Pure-JAX reference mirroring the PyTorch forward (conv -> flatten -> transpose)."""
    y = jax.lax.conv_general_dilated(
        x, w, window_strides=(patch_size, patch_size), padding="VALID",
        dimension_numbers=("NCHW", "OIHW", "NCHW"))
    y = y + b.reshape(1, -1, 1, 1)
    B, E, Hp, Wp = y.shape
    return y.reshape(B, E, Hp * Wp).transpose(0, 2, 1)


if __name__ == "__main__":
    key = jax.random.PRNGKey(0)
    kx, kw, kb = jax.random.split(key, 3)

    # Small but module-consistent shapes: 16x16 image, 4x4 patches -> 16 patches/img,
    # embed_dim=128 keeps the output lane dimension dense (multiple of 128).
    B, C = 2, 3
    img_size, patch_size, embed_dim = 16, 4, 128

    x = jax.random.normal(kx, (B, C, img_size, img_size), jnp.float32)

    # Conv2d-style weight (E, C, P, P) and bias (E,), ~kaiming-uniform scale.
    fan_in = C * patch_size * patch_size
    lim = 1.0 / math.sqrt(fan_in)
    w = jax.random.uniform(kw, (embed_dim, C, patch_size, patch_size),
                           jnp.float32, -lim, lim)
    b = jax.random.uniform(kb, (embed_dim,), jnp.float32, -lim, lim)

    y = patch_embed_pallas(x, w, b, patch_size=patch_size)
    y = jax.block_until_ready(y)

    y_ref = patch_embed_reference(x, w, b, patch_size=patch_size)
    assert y.shape == (B, (img_size // patch_size) ** 2, embed_dim)
    assert jnp.allclose(y, y_ref, atol=1e-4, rtol=1e-4), "mismatch vs reference"

    print("KERNEL_OK")
</pallas_src>

<mosaic_0001>
module attributes {stable_mosaic.version = 11 : i64} {
  func.func @_patch_embed_kernel(%arg0: i32, %arg1: memref<16x48xf32, #tpu.memory_space<vmem>>, %arg2: memref<48x128xf32, #tpu.memory_space<vmem>>, %arg3: memref<1x128xf32, #tpu.memory_space<vmem>>, %arg4: memref<16x128xf32, #tpu.memory_space<vmem>>) attributes {dimension_semantics = [#tpu.dimension_semantics<parallel>], iteration_bounds = array<i64: 2>, scalar_prefetch = 0 : i64, scratch_operands = 0 : i64, tpu.core_type = #tpu.core_type<tc>, window_params = [{transform_indices = @transform_0, window_bounds = array<i64: 16, 48>}, {pipeline_mode = #tpu.pipeline_mode<synchronous>, transform_indices = @transform_1, window_bounds = array<i64: 48, 128>}, {pipeline_mode = #tpu.pipeline_mode<synchronous>, transform_indices = @transform_2, window_bounds = array<i64: 1, 128>}, {transform_indices = @transform_3, window_bounds = array<i64: 16, 128>}]} {
    %c0 = arith.constant 0 : index
    %c0_0 = arith.constant 0 : index
    %0 = vector.load %arg1[%c0, %c0_0] : memref<16x48xf32, #tpu.memory_space<vmem>>, vector<16x48xf32>
    %c0_1 = arith.constant 0 : index
    %c0_2 = arith.constant 0 : index
    %1 = vector.load %arg2[%c0_1, %c0_2] : memref<48x128xf32, #tpu.memory_space<vmem>>, vector<48x128xf32>
    %cst = arith.constant dense<0.000000e+00> : vector<16x128xf32>
    %2 = tpu.matmul %0, %1, %cst {dimension_numbers = #tpu.dot_dimension_numbers<[1], [0], [0], [1], [0, 0, 1, 1], [], []>} : vector<16x48xf32>, vector<48x128xf32>, vector<16x128xf32> -> vector<16x128xf32>
    %c0_3 = arith.constant 0 : index
    %c0_4 = arith.constant 0 : index
    %3 = vector.load %arg3[%c0_3, %c0_4] : memref<1x128xf32, #tpu.memory_space<vmem>>, vector<1x128xf32>
    %4 = vector.broadcast %3 : vector<1x128xf32> to vector<16x128xf32>
    %5 = arith.addf %2, %4 : vector<16x128xf32>
    %c0_5 = arith.constant 0 : index
    %c0_6 = arith.constant 0 : index
    %6 = vector.load %arg4[%c0_5, %c0_6] : memref<16x128xf32, #tpu.memory_space<vmem>>, vector<16x128xf32>
    tpu.vector_store %arg4[%c0_5, %c0_6], %5 {strides = array<i32>} : memref<16x128xf32, #tpu.memory_space<vmem>>, vector<16x128xf32>,
    return
  }
  func.func @transform_0(%arg0: i32) -> (i32, i32) {
    %c0_i32 = arith.constant 0 : i32
    %c0_i32_0 = arith.constant 0 : i32
    return %arg0, %c0_i32 : i32, i32
  }
  func.func @transform_1(%arg0: i32) -> (i32, i32) {
    %c0_i32 = arith.constant 0 : i32
    %c0_i32_0 = arith.constant 0 : i32
    %c0_i32_1 = arith.constant 0 : i32
    return %c0_i32, %c0_i32_0 : i32, i32
  }
  func.func @transform_2(%arg0: i32) -> (i32, i32) {
    %c0_i32 = arith.constant 0 : i32
    %c0_i32_0 = arith.constant 0 : i32
    %c0_i32_1 = arith.constant 0 : i32
    return %c0_i32, %c0_i32_0 : i32, i32
  }
  func.func @transform_3(%arg0: i32) -> (i32, i32) {
    %c0_i32 = arith.constant 0 : i32
    %c0_i32_0 = arith.constant 0 : i32
    return %arg0, %c0_i32 : i32, i32
  }
}

</mosaic_0001>

<bundles_post_ra>
// kernel: tpu_custom_call.1
= control target key start
LH: loop header
LB: loop body
LE: loop exit
PB: predicated region body
PF: predicated region fallthrough
CT: control target
= control target key end

     0   :  { %8 = vsyncpa [#allocation3], 0  ;;  %s749_s0 = inlined_call_operand.hbm [shape: f32[32,48], index: 0, kind: input, shape index: {}]   ;;  %s750_s1 = inlined_call_operand.hbm [shape: f32[48,128], index: 1, kind: input, shape index: {}]   ;;  %s751_s2 = inlined_call_operand.vmem [shape: f32[1,128], index: 2, kind: input, shape index: {}]   ;;  %s752_s3 = inlined_call_operand.hbm [shape: f32[32,128], index: 3, kind: output, shape index: {}]  }
   0x1   :  { %10 = vsyncpa [#allocation3 + $0x1], 0 }
   0x2   :  { %11 = vsyncpa [#allocation6], 0 }
   0x3   :  { %12 = vsyncpa [#allocation4], 0 }
   0x4   :  { %14 = vsyncpa [#allocation4 + $0x1], 0  ;;  %s598_s12 = smov 0   ;;  %s600_s13 = smov 0  }
   0x5   :  { %s602_s14 = smov 0   ;;  %s604_s15 = smov 0  }
   0x6 LB: > { %s619_s16 = sadd.s32 4294967295, %s571_s15   ;;  %s353_s17 = sadd.s32 4294967294, %s571_s15   ;;  %s571_s15 = sphi %s604_s15, %s762_s15   ;;  %s567_s14 = sphi %s602_s14, %s761_s14   ;;  %s563_s13 = sphi %s600_s13, %s760_s13   ;;  %s559_s12 = sphi %s598_s12, %s759_s12  }
   0x7   : > { %p40_p0 = scmp.ne.s32.totalorder %s563_s13, %s559_s12  ;;  %p41_p1 = scmp.eq.s32.totalorder %s619_s16, 0 }
   0x8   : > { %p106_p2 = scmp.eq.s32.totalorder %s619_s16, 1  ;;  %p112_p3 = scmp.eq.s32.totalorder %s353_s17, 1 }
   0x9   : > { %p628_p4 = por %p41_p1, %p40_p0  ;;  %p354_p5 = scmp.ge.s32.totalorder %s571_s15, 1 }
   0xa   : > { %p633_p6 = por %p112_p3, %p40_p0  ;;  %p119_p7 = scmp.lt.s32.totalorder %s571_s15, 3 }
   0xb   : > { %s130_s22 = sshll.u32 %s750_s1, 4  ;;  %s573_s24 = smov [#allocation5]   ;;  %s131_s22 = int_to_ptr.hbm [resolvable:$true] %s130_s22 }
   0xc   : > { %p641_p8 = pnand %p354_p5, %p119_p7  ;;  %s132_s25 = sshll.u32 %s573_s24, 4  ;;  %s133_s25 = int_to_ptr.vmem [resolvable:$true] %s132_s25 }
   0xd   : > { %s651_s26 = sadd.s32 1, %s571_s15   ;;  %s574_s27 = smov 128  }
   0xe   : > { %p387_p9 = pneg %p641_p8  ;;  %s575_s28 = smov 8  }
   0xf   : > { %s24_s29 = ssub.s32 %s571_s15, %s651_s26  ;;  %s27_s30 = sadd.s32 1, %s567_s14 }
  0x10   : > { %p388_p10 = pnand %p387_p9, %p41_p1  ;;  %p25_p12 = scmp.eq.s32.totalorder %s24_s29, 0 }
  0x11   : > { %p34_p13 = scmp.ne.s32.totalorder %s567_s14, %s563_s13  ;;  %p35_p0 = scmp.eq.s32.totalorder %s571_s15, 0 }
  0x12   : > { %390 = dma.hbm_to_vmem [thread:$0]  (!%p388_p10), %s131_s22, 768, %s133_s25, [#allocation6], %s574_s27, %s574_s27, %s575_s28  }
  0x13   : > { %s663_s4 = scalar_select %p25_p12, %s567_s14, %s27_s30  }
  0x14   : > { %p667_p3 = por %p106_p2, %p34_p13  ;;  %p400_p5 = scmp.lt.s32.totalorder %s571_s15, 2 }
  0x15   : > { %s149_s6 = sand.u32 1, %s567_s14   ;;  %s371_s7 = sshll.u32 %s571_s15, 4 }
  0x16   : > { %p36_p7 = por %p35_p0, %p34_p13  ;;  %s357_s8 = sshll.u32 %s149_s6, 4 }
  0x17   : > { %s158_s11 = scalar_lea.hbm %s749_s0, %s371_s7  ;;  %s153_s20 = scalar_lea.vmem [#allocation2], %s357_s8 }
  0x18   : > { %s159_s17 = sshll.u32 %s158_s11, 4  ;;  %s161_s21 = sshll.u32 %s153_s20, 4  ;;  %s160_s17 = int_to_ptr.hbm [resolvable:$true] %s159_s17  ;;  %s162_s21 = int_to_ptr.vmem [resolvable:$true] %s161_s21 }
  0x19   : > { %p677_p9 = pnand %p400_p5, %p36_p7  ;;  %s150_s24 = scalar_lea.sflag [#allocation3], %s149_s6 }
  0x1a   : > { %s471_s25 = sshra.s32 %s160_s17, 4  ;;  %s478_s8 = scalar_lea.hbm %s749_s0, 32  ;;  %s472_s25 = int_to_ptr.hbm [resolvable:$true] %s471_s25 }
  0x1b   : > { %s473_s29 = scalar_lea.hbm %s472_s25, 16  ;;  %p475_p10 = pneg %p677_p9 }
  0x1c   : > { %p474_p2 = scmp.ne.s32.totalorder %s472_s25, %s473_s29  ;;  %p479_p0 = scmp.lt.s32.totalorder %s472_s25, %s749_s0 }
  0x1d   : > { %p480_p5 = scmp.lt.s32.totalorder %s478_s8, %s473_s29 }
  0x1e   : > { %p476_p12 = pnand %p475_p10, %p474_p2 }
  0x1f   : > { %p481_p7 = por %p480_p5, %p479_p0 }
  0x20   : > { %p477_p13 = pneg %p476_p12 }
  0x22   : > { %p482_p11 = pnand %p481_p7, %p477_p13 }
  0x24   : > { %485 = shalt.err (!%p482_p11)
}
  0x25   : > { %394 = dma.hbm_to_vmem [thread:$0]  (!%p677_p9), %s160_s17, 256, %s162_s21, %s150_s24, %s574_s27, %s574_s27, %s575_s28  }
  0x26   : > { %173 = sbr.rel (%p641_p8) target bundleno = 191 (0xbf), region = 32  ;;  %s697_s6 = sand.u32 (!%p641_p8), 1, %s563_s13  }
  0x27   : > { %s361_s11 = sshll.u32 (!%p641_p8), %s697_s6, 4  ;;  %s176_s20 = scalar_lea.sflag (!%p641_p8), [#allocation3], %s697_s6 }
  0x28   : > { %s179_s25 = scalar_lea.vmem (!%p641_p8), [#allocation2], %s361_s11 }
  0x2b   : > { %546 = dma.done.wait (%p628_p4), %s176_s20, 256  }
  0x2c   : > { %548 = vsyncadd (%p628_p4), %s176_s20, 4294967040 }
  0x2d   : > { %550 = dma.done.wait (%p41_p1), [#allocation6], 768  }
  0x2e   : > { %552 = vsyncadd (%p41_p1), [#allocation6], 4294966528  ;;  %v217_v0 = vld [vmem:[#allocation5 + $0x28] sm:$0xff]  ;;  %v216_v1 = vld [vmem:[#allocation5 + $0x20] sm:$0xff]  ;;  %vm222_vm0 = vcmask 392192   ;;  %s372_s18 = sshll.u32 %s619_s16, 4 }
  0x2f   : > { %239 = vmatpush.msra.mxu0 %v217_v0  ;;  %373 = vmatpush.msra.mxu1 %v217_v0  ;;  %v215_v2 = vld [vmem:[#allocation5 + $0x18] sm:$0xff]  ;;  %v214_v3 = vld [vmem:[#allocation5 + $0x10] sm:$0xff]  ;;  %v213_v4 = vld [vmem:[#allocation5 + $0x8] sm:$0xff]  ;;  %s266_s28 = scalar_lea.hbm %s752_s3, %s372_s18  ;;  %s207_s22 = scalar_lea.vmem [#allocation7], %s361_s11 }
  0x30   : > { %v212_v5 = vld [vmem:[#allocation5] sm:$0xff]  ;;  %v211_v7 = vld [vmem:[%s179_s25 + $0x8] sm:$0xff]  ;;  %s267_s24 = sshll.u32 %s207_s22, 4  ;;  %s269_s29 = sshll.u32 %s266_s28, 4  ;;  %s268_s24 = int_to_ptr.vmem [resolvable:$true] %s267_s24  ;;  %s270_s29 = int_to_ptr.hbm [resolvable:$true] %s269_s29 }
  0x31   : > { %240 = vmatpush.msra.mxu0 %v216_v1  ;;  %374 = vmatpush.msra.mxu1 %v216_v1  ;;  %v210_v6 = vld [vmem:[%s179_s25] sm:$0xff]  ;;  %s255_s16 = scalar_lea.sflag [#allocation4], %s697_s6  ;;  %s515_s30 = sshra.s32 %s270_s29, 4  ;;  %s516_s30 = int_to_ptr.hbm [resolvable:$true] %s515_s30 }
  0x32   : > { %v440_v8 = vld [vmem:[%s751_s2] ss:$0 sm:$0xff]  ;;  %s517_s7 = scalar_lea.hbm %s516_s30, 16  ;;  %s521_s10 = scalar_lea.hbm %s752_s3, 32 }
  0x33   : > { %241 = vmatpush.msra.mxu0 %v215_v2  ;;  %375 = vmatpush.msra.mxu1 %v215_v2  ;;  %p518_p1 = scmp.ne.s32.totalorder %s516_s30, %s517_s7  ;;  %p522_p11 = scmp.lt.s32.totalorder %s516_s30, %s752_s3 }
  0x34   : > { %p523_p9 = scmp.lt.s32.totalorder %s521_s10, %s517_s7 }
  0x35   : > { %242 = vmatpush.msra.mxu0 %v214_v3  ;;  %376 = vmatpush.msra.mxu1 %v214_v3  ;;  %p519_p4 = pnand %p518_p1, %p667_p3 }
  0x36   : > { %p524_p2 = por %p523_p9, %p522_p11 }
  0x37   : > { %243 = vmatpush.msra.mxu0 %v213_v4  ;;  %377 = vmatpush.msra.mxu1 %v213_v4  ;;  %p520_p8 = pneg %p519_p4 }
  0x39   : > { %244 = vmatpush.msra.mxu0 %v212_v5  ;;  %378 = vmatpush.msra.mxu1 %v212_v5  ;;  %p525_p10 = pnand %p524_p2, %p520_p8 }
  0x3a   : > { %364 = vmatmul.msk.f32.vlgmr.msra.gmra.mxu0 %vm222_vm0, %v210_v6  ;;  %365 = vmatmul.msk.f32.vlgmr.msra.gmra.mxu1 %vm222_vm0, %v211_v7 }
  0xb7   : > { %v246_v9 = vpop.f32.mrf.mxu0  ;;  %v249_v10 = vpop.f32.mrf.mxu1 }
  0xb8   : > { %v247_v11 = vadd.f32 %v440_v8, %v246_v9  ;;  %v250_v12 = vadd.f32 %v440_v8, %v249_v10 }
  0xba   : > { %252 = vst [vmem:[%s207_s22] sm:$0xff] %v247_v11 }
  0xbb   : > { %253 = vst [vmem:[%s207_s22 + $0x8] sm:$0xff] %v250_v12 }
  0xbc   : > { %528 = shalt.err (!%p525_p10)
}
  0xbd   : > { %s576_s6 = smov 128   ;;  %s577_s25 = smov 8  }
  0xbe   : > { %385 = dma.vmem_to_hbm [thread:$0]  (%p667_p3), %s268_s24, 256, %s270_s29, %s255_s16, %s576_s6, %s576_s6, %s577_s25  }
  0xbf PF: > { %s284_s18 = sand.u32 1, %s559_s12   ;;  %p758_p12 = scmp.ge.s32.totalorder %s571_s15, 2 }
  0xc0   : > { %s285_s23 = scalar_lea.sflag [#allocation4], %s284_s18 }
  0xc1   : > { %p396_p13 = pnand %p758_p12, %p633_p6 }
  0xc3   : > { %p397_p0 = pneg %p396_p13 }
  0xc5   : > { %554 = dma.done.wait (%p397_p0), %s285_s23, 256  }
  0xc6   : > { %556 = vsyncadd (%p397_p0), %s285_s23, 4294967040  ;;  %p17_p5 = scmp.ge.s32.totalorder %s651_s26, 4   ;;  %s759_s12 = smov %s563_s13 }
  0xc7   : > { %s760_s13 = smov %s567_s14  ;;  %s761_s14 = smov %s663_s4 }
  0xc8   : > { %s762_s15 = smov %s651_s26  ;;  %19 = sbr.rel (!%p17_p5) target bundleno = 6 (0x6), region = 81 }
  0xcd   :  { %291 = vsyncpa [#allocation3], 1 }
  0xce   :  { %293 = vsyncpa [#allocation3 + $0x1], 1 }
  0xcf   :  { %294 = vsyncpa [#allocation6], 1 }
  0xd0   :  { %295 = vsyncpa [#allocation4], 1 }
  0xd1   :  { %297 = vsyncpa [#allocation4 + $0x1], 1 }

</bundles_post_ra>
